<compile_context>
chip_gen: v5e
topology: v5e:2x2
jax: 0.10.0
libtpu: 0.0.40
codegen_flags: <defaults>
</compile_context>

<pallas_src>
import jax
import jax.numpy as jnp
from jax import lax
from jax.experimental import pallas as pl
from jax.experimental.pallas import tpu as pltpu


def _round_up(x: int, m: int) -> int:
    return ((x + m - 1) // m) * m


def _vmem_budget_bytes() -> int:
    """~75% of per-core VMEM (headroom for Mosaic internal scratch):
    128 MiB (v5e/v6e) -> 96 MiB, 64 MiB (v7x) -> 48 MiB."""
    try:
        cap = int(pltpu.get_tpu_info().vmem_capacity_bytes)
    except Exception:
        cap = 64 * 1024 * 1024  # conservative fallback (v7x per-core size)
    budget = (cap * 3) // 4
    return max(32 * 1024 * 1024, min(budget, 100 * 1024 * 1024))


def _choose_tiles(M: int, E_pad: int, H_pad: int, budget: int):
    """Pick (TM, TH, resident_weights) from static shapes + the VMEM budget.

    resident: TH == H_pad -> every weight block index is constant, so Pallas
    fetches W1/W2/b1 from HBM exactly once (no per-token-tile re-streaming).
    streaming: weights stream in TH-wide hidden chunks; per-weight-byte
    arithmetic intensity == TM, so TM is pushed toward 1024 and only shrunk
    to fit the VMEM budget.
    """

    def vmem_est(tm: int, th: int) -> int:
        return (2 * 2 * (2 * E_pad * th)      # bf16 W1 + W2 blocks, double-buffered
                + 2 * 4 * th                  # f32 b1 blocks
                + 2 * tm * E_pad * (2 + 4)    # x (bf16) + out (f32) tiles, double-buffered
                + 4 * E_pad                   # f32 b2 (resident)
                + 2 * tm * th * 4)            # fc1 / GELU temporaries (f32)

    M16 = _round_up(M, 16)                    # bf16 x-tiles pack (16, 128) per vreg

    # --- resident-weight mode: weights read from HBM exactly once -----------
    if vmem_est(256, H_pad) <= budget:
        TH = H_pad
        TM = min(512, M16)
        # Give both v7x TensorCores a token tile when there is enough work
        # (a couple of extra grid steps are harmless on single-TC v5e/v6e).
        if TM == M16 and M16 >= 32:
            TM = _round_up(M16 // 2, 16)
        while vmem_est(TM, TH) > budget and TM > 256:
            TM = max(256, _round_up(TM // 2, 16))
        return TM, TH, True

    # --- streaming mode: large TM to hide weight HBM traffic ----------------
    TH = 256
    for cand in (1024, 512):                  # largest hidden chunk dividing H_pad
        if H_pad % cand == 0:
            TH = cand
            break
    TM = min(1024, M16)
    while vmem_est(TM, TH) > budget:
        if TH > 256:
            TH //= 2                          # cheaper: does not hurt the TM roofline
        elif TM > 256:
            TM = max(256, _round_up(TM // 2, 16))
        else:
            break
    return TM, TH, False


def _mlp_kernel(x_ref, w1_ref, b1_ref, w2_ref, b2_ref, o_ref):
    # Grid = (token tiles, hidden chunks).  For each hidden chunk:
    #   o += gelu(x @ W1[:, chunk] + b1[chunk]) @ W2[chunk, :]
    # x_ref:  (TM, E_pad)  bf16  (resident across the hidden axis)
    # w1_ref: (E_pad, TH)  bf16      b1_ref: (1, TH)     f32
    # w2_ref: (TH, E_pad)  bf16      b2_ref: (1, E_pad)  f32 (resident)
    # o_ref:  (TM, E_pad)  f32   (resident accumulator; written back to HBM
    #                             once per token tile, after the last chunk)
    h_idx = pl.program_id(1)

    @pl.when(h_idx == 0)
    def _init():
        # Start the accumulation from the fc2 bias (broadcast over rows).
        o_ref[...] = jnp.zeros_like(o_ref) + b2_ref[...]

    # fc1 chunk: bf16 MXU matmul with f32 accumulation; bias add in f32 (VPU).
    h = jnp.dot(x_ref[...], w1_ref[...], preferred_element_type=jnp.float32)
    h = h + b1_ref[...]

    # Exact GELU (torch.nn.GELU default): 0.5*x*(1+erf(x/sqrt(2))), f32 (EUP).
    h = 0.5 * h * (1.0 + lax.erf(h * jnp.float32(0.7071067811865476)))

    # fc2 chunk: accumulate directly into the resident f32 output block.
    o_ref[...] += jnp.dot(h.astype(jnp.bfloat16), w2_ref[...],
                          preferred_element_type=jnp.float32)

    # Dropout(p=0.1) in eval mode is the identity.
    # TODO(synk): training-mode dropout (pltpu.prng_random_bits mask) not implemented.


def prepare_mlp_params(w1, b1, w2, b2):
    """One-time pad + bf16 cast of the MLP parameters (keep OUT of the hot path)."""
    E, H = w1.shape
    E_pad = _round_up(E, 256)      # lane-dense + full-width MXU tiles on v6e/v7x
    H_pad = _round_up(H, 256)
    w1_p = jnp.pad(w1.astype(jnp.bfloat16), ((0, E_pad - E), (0, H_pad - H)))
    b1_p = jnp.pad(b1.reshape(1, H).astype(jnp.float32), ((0, 0), (0, H_pad - H)))
    w2_p = jnp.pad(w2.astype(jnp.bfloat16), ((0, H_pad - H), (0, E_pad - E)))
    b2_p = jnp.pad(b2.reshape(1, E).astype(jnp.float32), ((0, 0), (0, E_pad - E)))
    return w1_p, b1_p, w2_p, b2_p


@jax.jit
def mlp_forward(x, w1_p, b1_p, w2_p, b2_p):
    """x: (..., E) float32; parameters already padded/cast by prepare_mlp_params."""
    E = x.shape[-1]
    M = 1
    for d in x.shape[:-1]:
        M *= int(d)
    E_pad, H_pad = w1_p.shape

    budget = _vmem_budget_bytes()
    TM, TH, resident = _choose_tiles(M, E_pad, H_pad, budget)
    M_pad = _round_up(M, TM)
    grid = (M_pad // TM, H_pad // TH)

    # Activations: pad + cast per call (cheap relative to the weights).
    x_p = jnp.pad(x.reshape(M, E).astype(jnp.bfloat16),
                  ((0, M_pad - M), (0, E_pad - E)))

    weight_bytes = 2 * 2 * E_pad * H_pad                     # one full bf16 W1+W2 pass
    cost = pl.CostEstimate(
        flops=4 * M_pad * E_pad * H_pad,                     # two (M,E,H) matmuls
        transcendentals=M_pad * H_pad,                       # one erf per hidden act
        bytes_accessed=(M_pad * E_pad * 2                    # x read (bf16)
                        + (1 if resident else grid[0]) * weight_bytes
                        + H_pad * 4 + E_pad * 4              # biases (f32)
                        + M_pad * E_pad * 4),                # out write (f32)
    )

    # NOTE: when resident (TH == H_pad) the weight/b1 index maps evaluate to a
    # constant block index, so Pallas DMAs them exactly once and keeps them in
    # VMEM across all token tiles.
    out = pl.pallas_call(
        _mlp_kernel,
        out_shape=jax.ShapeDtypeStruct((M_pad, E_pad), jnp.float32),
        grid_spec=pltpu.PrefetchScalarGridSpec(
            num_scalar_prefetch=0,
            grid=grid,
            in_specs=[
                pl.BlockSpec((TM, E_pad), lambda i, h: (i, 0)),   # x (resident over h)
                pl.BlockSpec((E_pad, TH), lambda i, h: (0, h)),   # W1 hidden chunk
                pl.BlockSpec((1, TH), lambda i, h: (0, h)),       # b1 hidden chunk
                pl.BlockSpec((TH, E_pad), lambda i, h: (h, 0)),   # W2 hidden chunk
                pl.BlockSpec((1, E_pad), lambda i, h: (0, 0)),    # b2 (resident)
            ],
            out_specs=pl.BlockSpec((TM, E_pad), lambda i, h: (i, 0)),
        ),
        compiler_params=pltpu.CompilerParams(
            dimension_semantics=("parallel", "arbitrary"),
            vmem_limit_bytes=int(budget),
        ),
        cost_estimate=cost,
    )(x_p, w1_p, b1_p, w2_p, b2_p)

    return out[:M, :E].reshape(x.shape)


def init_mlp_params(key, n_embed):
    """nn.Linear default init: U(-1/sqrt(fan_in), 1/sqrt(fan_in))."""
    hidden = 4 * n_embed
    k1, k2, k3, k4 = jax.random.split(key, 4)
    lim1 = 1.0 / jnp.sqrt(jnp.float32(n_embed))
    lim2 = 1.0 / jnp.sqrt(jnp.float32(hidden))
    # Stored as (in_features, out_features) so the kernel computes x @ W.
    w1 = jax.random.uniform(k1, (n_embed, hidden), jnp.float32, -lim1, lim1)
    b1 = jax.random.uniform(k2, (1, hidden), jnp.float32, -lim1, lim1)
    w2 = jax.random.uniform(k3, (hidden, n_embed), jnp.float32, -lim2, lim2)
    b2 = jax.random.uniform(k4, (1, n_embed), jnp.float32, -lim2, lim2)
    return w1, b1, w2, b2


def _reference(x, w1, b1, w2, b2):
    h = x @ w1 + b1
    h = 0.5 * h * (1.0 + lax.erf(h / jnp.sqrt(jnp.float32(2.0))))
    return h @ w2 + b2


if __name__ == "__main__":
    B, S, n_embed = 2, 8, 32  # hidden = 4 * 32 = 128
    key = jax.random.PRNGKey(0)
    kx, kp = jax.random.split(key)

    x = jax.random.normal(kx, (B, S, n_embed), jnp.float32)
    w1, b1, w2, b2 = init_mlp_params(kp, n_embed)

    # One-time parameter prep (pad + bf16 cast) -- outside the hot path.
    params = jax.block_until_ready(prepare_mlp_params(w1, b1, w2, b2))

    y = jax.block_until_ready(mlp_forward(x, *params))

    y_ref = _reference(x.reshape(B * S, n_embed), w1, b1, w2, b2).reshape(B, S, n_embed)
    # bf16 MXU path with f32 accumulation: loosened tolerance vs. f32 reference.
    assert y.shape == x.shape
    assert jnp.allclose(y, y_ref, atol=3e-2, rtol=3e-2), "mismatch vs reference"

    print("KERNEL_OK")
</pallas_src>

<mosaic_0001>
module attributes {stable_mosaic.version = 11 : i64} {
  func.func @_mlp_kernel(%arg0: i32, %arg1: i32, %arg2: memref<16x256xbf16, #tpu.memory_space<vmem>>, %arg3: memref<256x256xbf16, #tpu.memory_space<vmem>>, %arg4: memref<1x256xf32, #tpu.memory_space<vmem>>, %arg5: memref<256x256xbf16, #tpu.memory_space<vmem>>, %arg6: memref<1x256xf32, #tpu.memory_space<vmem>>, %arg7: memref<16x256xf32, #tpu.memory_space<vmem>>) attributes {dimension_semantics = [#tpu.dimension_semantics<parallel>, #tpu.dimension_semantics<arbitrary>], iteration_bounds = array<i64: 1, 1>, scalar_prefetch = 0 : i64, scratch_operands = 0 : i64, tpu.core_type = #tpu.core_type<tc>, window_params = [{transform_indices = @transform_0, window_bounds = array<i64: 16, 256>}, {transform_indices = @transform_1, window_bounds = array<i64: 256, 256>}, {transform_indices = @transform_2, window_bounds = array<i64: 1, 256>}, {transform_indices = @transform_3, window_bounds = array<i64: 256, 256>}, {pipeline_mode = #tpu.pipeline_mode<synchronous>, transform_indices = @transform_4, window_bounds = array<i64: 1, 256>}, {transform_indices = @transform_5, window_bounds = array<i64: 16, 256>}]} {
    %c0_i32 = arith.constant 0 : i32
    %0 = arith.cmpi eq, %arg1, %c0_i32 : i32
    %1 = arith.extui %0 : i1 to i32
    %c0_i32_0 = arith.constant 0 : i32
    %2 = arith.cmpi ne, %1, %c0_i32_0 : i32
    scf.if %2 {
      %cst_16 = arith.constant 0.000000e+00 : f32
      %23 = vector.broadcast %cst_16 : f32 to vector<16x256xf32>
      %c0_17 = arith.constant 0 : index
      %c0_18 = arith.constant 0 : index
      %24 = vector.load %arg6[%c0_17, %c0_18] : memref<1x256xf32, #tpu.memory_space<vmem>>, vector<1x256xf32>
      %25 = vector.broadcast %24 : vector<1x256xf32> to vector<16x256xf32>
      %26 = arith.addf %23, %25 : vector<16x256xf32>
      %c0_19 = arith.constant 0 : index
      %c0_20 = arith.constant 0 : index
      %27 = vector.load %arg7[%c0_19, %c0_20] : memref<16x256xf32, #tpu.memory_space<vmem>>, vector<16x256xf32>
      tpu.vector_store %arg7[%c0_19, %c0_20], %26 {strides = array<i32>} : memref<16x256xf32, #tpu.memory_space<vmem>>, vector<16x256xf32>,
    } else {
    }
    %c0 = arith.constant 0 : index
    %c0_1 = arith.constant 0 : index
    %3 = vector.load %arg2[%c0, %c0_1] : memref<16x256xbf16, #tpu.memory_space<vmem>>, vector<16x256xbf16>
    %c0_2 = arith.constant 0 : index
    %c0_3 = arith.constant 0 : index
    %4 = vector.load %arg3[%c0_2, %c0_3] : memref<256x256xbf16, #tpu.memory_space<vmem>>, vector<256x256xbf16>
    %cst = arith.constant dense<0.000000e+00> : vector<16x256xf32>
    %5 = tpu.matmul %3, %4, %cst {dimension_numbers = #tpu.dot_dimension_numbers<[1], [0], [0], [1], [0, 0, 1, 1], [], []>} : vector<16x256xbf16>, vector<256x256xbf16>, vector<16x256xf32> -> vector<16x256xf32>
    %c0_4 = arith.constant 0 : index
    %c0_5 = arith.constant 0 : index
    %6 = vector.load %arg4[%c0_4, %c0_5] : memref<1x256xf32, #tpu.memory_space<vmem>>, vector<1x256xf32>
    %7 = vector.broadcast %6 : vector<1x256xf32> to vector<16x256xf32>
    %8 = arith.addf %5, %7 : vector<16x256xf32>
    %cst_6 = arith.constant 5.000000e-01 : f32
    %9 = vector.broadcast %cst_6 : f32 to vector<16x256xf32>
    %10 = arith.mulf %9, %8 : vector<16x256xf32>
    %cst_7 = arith.constant 0.707106769 : f32
    %11 = vector.broadcast %cst_7 : f32 to vector<16x256xf32>
    %12 = arith.mulf %8, %11 : vector<16x256xf32>
    %13 = math.erf %12 : vector<16x256xf32>
    %cst_8 = arith.constant 1.000000e+00 : f32
    %14 = vector.broadcast %cst_8 : f32 to vector<16x256xf32>
    %15 = arith.addf %14, %13 : vector<16x256xf32>
    %16 = arith.mulf %10, %15 : vector<16x256xf32>
    %c0_9 = arith.constant 0 : index
    %c0_10 = arith.constant 0 : index
    %17 = vector.load %arg7[%c0_9, %c0_10] : memref<16x256xf32, #tpu.memory_space<vmem>>, vector<16x256xf32>
    %18 = arith.truncf %16 : vector<16x256xf32> to vector<16x256xbf16>
    %c0_11 = arith.constant 0 : index
    %c0_12 = arith.constant 0 : index
    %19 = vector.load %arg5[%c0_11, %c0_12] : memref<256x256xbf16, #tpu.memory_space<vmem>>, vector<256x256xbf16>
    %cst_13 = arith.constant dense<0.000000e+00> : vector<16x256xf32>
    %20 = tpu.matmul %18, %19, %cst_13 {dimension_numbers = #tpu.dot_dimension_numbers<[1], [0], [0], [1], [0, 0, 1, 1], [], []>} : vector<16x256xbf16>, vector<256x256xbf16>, vector<16x256xf32> -> vector<16x256xf32>
    %21 = arith.addf %17, %20 : vector<16x256xf32>
    %c0_14 = arith.constant 0 : index
    %c0_15 = arith.constant 0 : index
    %22 = vector.load %arg7[%c0_14, %c0_15] : memref<16x256xf32, #tpu.memory_space<vmem>>, vector<16x256xf32>
    tpu.vector_store %arg7[%c0_14, %c0_15], %21 {strides = array<i32>} : memref<16x256xf32, #tpu.memory_space<vmem>>, vector<16x256xf32>,
    return
  }
  func.func @transform_0(%arg0: i32, %arg1: i32) -> (i32, i32) {
    %c0_i32 = arith.constant 0 : i32
    %c0_i32_0 = arith.constant 0 : i32
    return %arg0, %c0_i32 : i32, i32
  }
  func.func @transform_1(%arg0: i32, %arg1: i32) -> (i32, i32) {
    %c0_i32 = arith.constant 0 : i32
    %c0_i32_0 = arith.constant 0 : i32
    return %c0_i32, %arg1 : i32, i32
  }
  func.func @transform_2(%arg0: i32, %arg1: i32) -> (i32, i32) {
    %c0_i32 = arith.constant 0 : i32
    %c0_i32_0 = arith.constant 0 : i32
    return %c0_i32, %arg1 : i32, i32
  }
  func.func @transform_3(%arg0: i32, %arg1: i32) -> (i32, i32) {
    %c0_i32 = arith.constant 0 : i32
    %c0_i32_0 = arith.constant 0 : i32
    return %arg1, %c0_i32 : i32, i32
  }
  func.func @transform_4(%arg0: i32, %arg1: i32) -> (i32, i32) {
    %c0_i32 = arith.constant 0 : i32
    %c0_i32_0 = arith.constant 0 : i32
    %c0_i32_1 = arith.constant 0 : i32
    return %c0_i32, %c0_i32_0 : i32, i32
  }
  func.func @transform_5(%arg0: i32, %arg1: i32) -> (i32, i32) {
    %c0_i32 = arith.constant 0 : i32
    %c0_i32_0 = arith.constant 0 : i32
    return %arg0, %c0_i32 : i32, i32
  }
}

</mosaic_0001>

<bundles_post_ra>
// kernel: mlp_forward.1
= control target key start
LH: loop header
LB: loop body
LE: loop exit
PB: predicated region body
PF: predicated region fallthrough
CT: control target
= control target key end

     0   :  { %10 = vsyncpa [#allocation3], 0  ;;  %s1404_s0 = inlined_call_operand.vmem [shape: bf16[16,256], index: 0, kind: input, shape index: {}]   ;;  %s1405_s1 = inlined_call_operand.hbm [shape: bf16[256,256], index: 1, kind: input, shape index: {}]   ;;  %s1406_s2 = inlined_call_operand.vmem [shape: f32[1,256], index: 2, kind: input, shape index: {}]   ;;  %s1407_s3 = inlined_call_operand.hbm [shape: bf16[256,256], index: 3, kind: input, shape index: {}]   ;;  %s1408_s4 = inlined_call_operand.vmem [shape: f32[1,256], index: 4, kind: input, shape index: {}]   ;;  %s1409_s5 = inlined_call_operand.vmem [shape: f32[16,256], index: 5, kind: output, shape index: {}]  }
   0x1   :  { %s18_s20 = sshll.u32 %s1405_s1, 4  ;;  %s19_s20 = int_to_ptr.hbm [resolvable:$true] %s18_s20 }
   0x2   :  { %11 = vsyncpa [#allocation5], 0  ;;  %s1176_s21 = smov [#allocation2]   ;;  %s33_s25 = sshll.u32 %s1407_s3, 4  ;;  %s34_s25 = int_to_ptr.hbm [resolvable:$true] %s33_s25 }
   0x3   :  { %s20_s22 = sshll.u32 %s1176_s21, 4  ;;  %s1177_s26 = smov 128   ;;  %s21_s22 = int_to_ptr.vmem [resolvable:$true] %s20_s22 }
   0x4   :  { %s1178_s27 = smov 8   ;;  %s1179_s28 = smov [#allocation4]  }
   0x5   :  { %26 = dma.hbm_to_vmem [thread:$0]  %s19_s20, 4096, %s21_s22, [#allocation3], %s1177_s26, %s1177_s26, %s1178_s27  }
   0x6   :  { %s35_s29 = sshll.u32 %s1179_s28, 4  ;;  %s36_s29 = int_to_ptr.vmem [resolvable:$true] %s35_s29 }
   0x7   :  { %41 = dma.hbm_to_vmem [thread:$0]  %s34_s25, 4096, %s36_s29, [#allocation5], %s1177_s26, %s1177_s26, %s1178_s27  }
   0x8   :  { %1172 = dma.done.wait [#allocation3], 4096  }
   0x9   :  { %1173 = vsyncadd [#allocation3], 4294963200 }
   0xa   :  { %1174 = dma.done.wait [#allocation5], 4096  }
   0xb   :  { %1175 = vsyncadd [#allocation5], 4294963200  ;;  %v844_v0 = vld [vmem:[#allocation2 + $0x70] sm:$0xf]  ;;  %v1063_v1 = vld [vmem:[#allocation2 + $0x74] sm:$0xf0] }
   0xc   :  { %v908_v2 = vld [vmem:[#allocation2 + $0xf0] sm:$0xf]  ;;  %v845_v3 = vor.u32 %v1063_v1, %v844_v0  ;;  %v1079_v4 = vld [vmem:[#allocation2 + $0xf4] sm:$0xf0]  ;;  %v1062_v5 = vld [vmem:[#allocation2 + $0x74] sm:$0xf] }
   0xd   :  { %v846_v6 = vld [vmem:[#allocation2 + $0x78] sm:$0xf0]  ;;  %v909_v7 = vor.u32 %v1079_v4, %v908_v2  ;;  %v1078_v9 = vld [vmem:[#allocation2 + $0xf4] sm:$0xf]  ;;  %v836_v11 = vld [vmem:[#allocation2 + $0x60] sm:$0xf] }
   0xe   :  { %v849_v8 = vor.u32 %v1062_v5, %v846_v6  ;;  %v910_v10 = vld [vmem:[#allocation2 + $0xf8] sm:$0xf0]  ;;  %278 = vmatpush.bf16.msra.mxu0 %v845_v3  ;;  %v1061_v13 = vld [vmem:[#allocation2 + $0x64] sm:$0xf0]  ;;  %v900_v14 = vld [vmem:[#allocation2 + $0xe0] sm:$0xf] }
   0xf   :  { %v913_v12 = vor.u32 %v1078_v9, %v910_v10  ;;  %v1077_v15 = vld [vmem:[#allocation2 + $0xe4] sm:$0xf0]  ;;  %292 = vmatpush.bf16.msra.mxu1 %v909_v7  ;;  %v837_v16 = vor.u32 %v1061_v13, %v836_v11  ;;  %v1060_v18 = vld [vmem:[#allocation2 + $0x64] sm:$0xf]  ;;  %v838_v19 = vld [vmem:[#allocation2 + $0x68] sm:$0xf0] }
  0x10   :  { %306 = vmatpush.bf16.msra.mxu2 %v849_v8  ;;  %v901_v17 = vor.u32 %v1077_v15, %v900_v14  ;;  %v1076_v20 = vld [vmem:[#allocation2 + $0xe4] sm:$0xf]  ;;  %v841_v21 = vor.u32 %v1060_v18, %v838_v19  ;;  %v902_v22 = vld [vmem:[#allocation2 + $0xe8] sm:$0xf0]  ;;  %v828_v23 = vld [vmem:[#allocation2 + $0x50] sm:$0xf] }
  0x11   :  { %320 = vmatpush.bf16.msra.mxu3 %v913_v12  ;;  %v1059_v24 = vld [vmem:[#allocation2 + $0x54] sm:$0xf0]  ;;  %v905_v25 = vor.u32 %v1076_v20, %v902_v22  ;;  %v892_v26 = vld [vmem:[#allocation2 + $0xd0] sm:$0xf]  ;;  %v1058_v28 = vld [vmem:[#allocation2 + $0x54] sm:$0xf] }
  0x12   :  { %v1075_v27 = vld [vmem:[#allocation2 + $0xd4] sm:$0xf0]  ;;  %279 = vmatpush.bf16.msra.mxu0 %v837_v16  ;;  %v829_v29 = vor.u32 %v1059_v24, %v828_v23  ;;  %v830_v30 = vld [vmem:[#allocation2 + $0x58] sm:$0xf0]  ;;  %v1074_v31 = vld [vmem:[#allocation2 + $0xd4] sm:$0xf] }
  0x13   :  { %v894_v32 = vld [vmem:[#allocation2 + $0xd8] sm:$0xf0]  ;;  %293 = vmatpush.bf16.msra.mxu1 %v901_v17  ;;  %v893_v33 = vor.u32 %v1075_v27, %v892_v26  ;;  %v833_v34 = vor.u32 %v1058_v28, %v830_v30  ;;  %v820_v35 = vld [vmem:[#allocation2 + $0x40] sm:$0xf]  ;;  %v1057_v36 = vld [vmem:[#allocation2 + $0x44] sm:$0xf0] }
  0x14   :  { %307 = vmatpush.bf16.msra.mxu2 %v841_v21  ;;  %v884_v37 = vld [vmem:[#allocation2 + $0xc0] sm:$0xf]  ;;  %v897_v38 = vor.u32 %v1074_v31, %v894_v32  ;;  %v1073_v39 = vld [vmem:[#allocation2 + $0xc4] sm:$0xf0]  ;;  %v1056_v40 = vld [vmem:[#allocation2 + $0x44] sm:$0xf]  ;;  %v821_v44 = vor.u32 %v1057_v36, %v820_v35 }
  0x15   :  { %321 = vmatpush.bf16.msra.mxu3 %v905_v25  ;;  %v822_v41 = vld [vmem:[#allocation2 + $0x48] sm:$0xf0]  ;;  %v1072_v42 = vld [vmem:[#allocation2 + $0xc4] sm:$0xf]  ;;  %v885_v45 = vor.u32 %v1073_v39, %v884_v37  ;;  %v812_v47 = vld [vmem:[#allocation2 + $0x30] sm:$0xf] }
  0x16   :  { %v886_v43 = vld [vmem:[#allocation2 + $0xc8] sm:$0xf0]  ;;  %280 = vmatpush.bf16.msra.mxu0 %v829_v29  ;;  %v825_v46 = vor.u32 %v1056_v40, %v822_v41  ;;  %v1055_v48 = vld [vmem:[#allocation2 + $0x34] sm:$0xf0]  ;;  %v876_v49 = vld [vmem:[#allocation2 + $0xb0] sm:$0xf] }
  0x17   :  { %294 = vmatpush.bf16.msra.mxu1 %v893_v33  ;;  %v889_v50 = vor.u32 %v1072_v42, %v886_v43  ;;  %v1071_v51 = vld [vmem:[#allocation2 + $0xb4] sm:$0xf0]  ;;  %v1054_v52 = vld [vmem:[#allocation2 + $0x34] sm:$0xf]  ;;  %v814_v53 = vld [vmem:[#allocation2 + $0x38] sm:$0xf0]  ;;  %v813_v56 = vor.u32 %v1055_v48, %v812_v47 }
  0x18   :  { %308 = vmatpush.bf16.msra.mxu2 %v833_v34  ;;  %v1070_v54 = vld [vmem:[#allocation2 + $0xb4] sm:$0xf]  ;;  %v878_v55 = vld [vmem:[#allocation2 + $0xb8] sm:$0xf0]  ;;  %v877_v57 = vor.u32 %v1071_v51, %v876_v49  ;;  %v817_v58 = vor.u32 %v1054_v52, %v814_v53  ;;  %v804_v59 = vld [vmem:[#allocation2 + $0x20] sm:$0xf] }
  0x19   :  { %322 = vmatpush.bf16.msra.mxu3 %v897_v38  ;;  %v1053_v60 = vld [vmem:[#allocation2 + $0x24] sm:$0xf0]  ;;  %v868_v61 = vld [vmem:[#allocation2 + $0xa0] sm:$0xf]  ;;  %v881_v62 = vor.u32 %v1070_v54, %v878_v55  ;;  %v1052_v0 = vld [vmem:[#allocation2 + $0x24] sm:$0xf] }
  0x1a   :  { %281 = vmatpush.bf16.msra.mxu0 %v821_v44  ;;  %v1069_v63 = vld [vmem:[#allocation2 + $0xa4] sm:$0xf0]  ;;  %v806_v1 = vld [vmem:[#allocation2 + $0x28] sm:$0xf0]  ;;  %v1068_v2 = vld [vmem:[#allocation2 + $0xa4] sm:$0xf]  ;;  %v805_v4 = vor.u32 %v1053_v60, %v804_v59 }
  0x1b   :  { %295 = vmatpush.bf16.msra.mxu1 %v885_v45  ;;  %v870_v3 = vld [vmem:[#allocation2 + $0xa8] sm:$0xf0]  ;;  %v869_v5 = vor.u32 %v1069_v63, %v868_v61  ;;  %v809_v6 = vor.u32 %v1052_v0, %v806_v1  ;;  %v796_v7 = vld [vmem:[#allocation2 + $0x10] sm:$0xf]  ;;  %v1051_v8 = vld [vmem:[#allocation2 + $0x14] sm:$0xf0] }
  0x1c   :  { %309 = vmatpush.bf16.msra.mxu2 %v825_v46  ;;  %v860_v9 = vld [vmem:[#allocation2 + $0x90] sm:$0xf]  ;;  %v873_v10 = vor.u32 %v1068_v2, %v870_v3  ;;  %v1067_v11 = vld [vmem:[#allocation2 + $0x94] sm:$0xf0]  ;;  %v1050_v12 = vld [vmem:[#allocation2 + $0x14] sm:$0xf]  ;;  %v797_v16 = vor.u32 %v1051_v8, %v796_v7 }
  0x1d   :  { %323 = vmatpush.bf16.msra.mxu3 %v889_v50  ;;  %v798_v13 = vld [vmem:[#allocation2 + $0x18] sm:$0xf0]  ;;  %v1066_v14 = vld [vmem:[#allocation2 + $0x94] sm:$0xf]  ;;  %v861_v17 = vor.u32 %v1067_v11, %v860_v9  ;;  %v788_v19 = vld [vmem:[#allocation2] sm:$0xf] }
  0x1e   :  { %282 = vmatpush.bf16.msra.mxu0 %v813_v56  ;;  %v862_v15 = vld [vmem:[#allocation2 + $0x98] sm:$0xf0]  ;;  %v801_v18 = vor.u32 %v1050_v12, %v798_v13  ;;  %v1049_v20 = vld [vmem:[#allocation2 + $0x4] sm:$0xf0]  ;;  %v852_v21 = vld [vmem:[#allocation2 + $0x80] sm:$0xf] }
  0x1f   :  { %296 = vmatpush.bf16.msra.mxu1 %v877_v57  ;;  %v865_v22 = vor.u32 %v1066_v14, %v862_v15  ;;  %v1065_v23 = vld [vmem:[#allocation2 + $0x84] sm:$0xf0]  ;;  %v1048_v24 = vld [vmem:[#allocation2 + $0x4] sm:$0xf]  ;;  %v790_v25 = vld [vmem:[#allocation2 + $0x8] sm:$0xf0]  ;;  %v789_v28 = vor.u32 %v1049_v20, %v788_v19 }
  0x20   :  { %310 = vmatpush.bf16.msra.mxu2 %v817_v58  ;;  %v1064_v26 = vld [vmem:[#allocation2 + $0x84] sm:$0xf]  ;;  %v854_v27 = vld [vmem:[#allocation2 + $0x88] sm:$0xf0]  ;;  %v780_v29 = vld [vmem:[%s1404_s0] sm:$0xf]  ;;  %v853_v31 = vor.u32 %v1065_v23, %v852_v21  ;;  %v793_v32 = vor.u32 %v1048_v24, %v790_v25 }
  0x21   :  { %324 = vmatpush.bf16.msra.mxu3 %v881_v62  ;;  %v1047_v30 = vld [vmem:[%s1404_s0 + $0x4] sm:$0xf0]  ;;  %v1046_v33 = vld [vmem:[%s1404_s0 + $0x4] sm:$0xf]  ;;  %v782_v34 = vld [vmem:[%s1404_s0 + $0x8] sm:$0xf0]  ;;  %v857_v35 = vor.u32 %v1064_v26, %v854_v27 }
  0x22   :  { %283 = vmatpush.bf16.msra.mxu0 %v805_v4  ;;  %v781_v36 = vor.u32 %v1047_v30, %v780_v29  ;;  %v785_v37 = vor.u32 %v1046_v33, %v782_v34  ;;  %v102_v38 = vld [vmem:[%s1406_s2] sm:$0x3]  ;;  %v976_v58 = vld [vmem:[#allocation4 + $0x70] sm:$0xf]  ;;  %v1095_v60 = vld [vmem:[#allocation4 + $0x74] sm:$0xf0] }
  0x23   :  { %297 = vmatpush.bf16.msra.mxu1 %v869_v5  ;;  %v104_v39 = vperm.slane %v102_v38, 0  ;;  %v105_v44 = vperm.slane %v102_v38, 1  ;;  %v977_v63 = vor.u32 %v1095_v60, %v976_v58  ;;  %v1094_v2 = vld [vmem:[#allocation4 + $0x74] sm:$0xf]  ;;  %v978_v3 = vld [vmem:[#allocation4 + $0x78] sm:$0xf0] }
  0x24   :  { %311 = vmatpush.bf16.msra.mxu2 %v809_v6  ;;  %v981_v7 = vor.u32 %v1094_v2, %v978_v3  ;;  %v968_v8 = vld [vmem:[#allocation4 + $0x60] sm:$0xf]  ;;  %v1093_v9 = vld [vmem:[#allocation4 + $0x64] sm:$0xf0]  ;;  %v970_v15 = vld [vmem:[#allocation4 + $0x68] sm:$0xf0] }
  0x25   :  { %325 = vmatpush.bf16.msra.mxu3 %v873_v10  ;;  %v1092_v10 = vld [vmem:[#allocation4 + $0x64] sm:$0xf]  ;;  %v969_v14 = vor.u32 %v1093_v9, %v968_v8  ;;  %v1040_v19 = vld [vmem:[#allocation4 + $0xf0] sm:$0xf]  ;;  %v1111_v27 = vld [vmem:[#allocation4 + $0xf4] sm:$0xf0] }
  0x26   :  { %284 = vmatpush.bf16.msra.mxu0 %v797_v16  ;;  %v1042_v29 = vld [vmem:[#allocation4 + $0xf8] sm:$0xf0]  ;;  %v1041_v33 = vor.u32 %v1111_v27, %v1040_v19  ;;  %v1109_v2 = vld [vmem:[#allocation4 + $0xe4] sm:$0xf0] }
  0x27   :  { %298 = vmatpush.bf16.msra.mxu1 %v861_v17  ;;  %v962_v60 = vld [vmem:[#allocation4 + $0x58] sm:$0xf0] }
  0x28   :  { %312 = vmatpush.bf16.msra.mxu2 %v801_v18  ;;  %v973_v18 = vor.u32 %v1092_v10, %v970_v15 }
  0x29   :  { %326 = vmatpush.bf16.msra.mxu3 %v865_v22 }
  0x2a   :  { %285 = vmatpush.bf16.msra.mxu0 %v789_v28  ;;  %v1110_v28 = vld [vmem:[#allocation4 + $0xf4] sm:$0xf] }
  0x2b   :  { %299 = vmatpush.bf16.msra.mxu1 %v853_v31 }
  0x2c   :  { %313 = vmatpush.bf16.msra.mxu2 %v793_v32 }
  0x2d   :  { %327 = vmatpush.bf16.msra.mxu3 %v857_v35  ;;  %286 = vmatmul.bf16.vlgmr.msra.gmra.mxu0 %v781_v36 }
  0x2e   :  { %300 = vmatmul.bf16.vlgmr.msra.gmra.mxu1 %v785_v37  ;;  %708 = vmatpush.bf16.msrb.mxu0 %v977_v63 }
  0x2f   :  { %314 = vmatmul.bf16.vlgmr.msra.gmra.mxu2 %v781_v36  ;;  %722 = vmatpush.bf16.msrb.mxu1 %v1041_v33 }
  0x30   :  { %328 = vmatmul.bf16.vlgmr.msra.gmra.mxu3 %v785_v37  ;;  %736 = vmatpush.bf16.msrb.mxu2 %v981_v7  ;;  %v1045_v37 = vor.u32 %v1110_v28, %v1042_v29  ;;  %v1088_v29 = vld [vmem:[#allocation4 + $0x44] sm:$0xf] }
  0x32   :  { %709 = vmatpush.bf16.msrb.mxu0 %v969_v14  ;;  %750 = vmatpush.bf16.msrb.mxu3 %v1045_v37  ;;  %v1107_v37 = vld [vmem:[#allocation4 + $0xd4] sm:$0xf0] }
  0x34   :  { %737 = vmatpush.bf16.msrb.mxu2 %v973_v18 }
  0xaa   :  { %v287_v40 = vpop.f32.mrf.mxu0 }
  0xab   :  { %v288_v41 = vadd.f32 %v287_v40, %v104_v39  ;;  %v301_v42 = vpop.f32.mrf.mxu1  ;;  %v960_v40 = vld [vmem:[#allocation4 + $0x50] sm:$0xf] }
  0xad   :  { %v1231_v43 = vadd.f32 %v301_v42, %v288_v41 }
  0xaf   :  { %v1234_v45 = vmul.f32 0.70710677, %v1231_v43 }
  0xb1   :  { %v342_v46 = vmul.f32 %v1234_v45, %v1234_v45 }
  0xb2   :  { %v315_v47 = vpop.f32.mrf.mxu2  ;;  %v289_v50 = vpop.f32.mrf.mxu0 }
  0xb3   :  { %v316_v48 = vadd.f32 %v315_v47, %v105_v44  ;;  %v329_v49 = vpop.f32.mrf.mxu3  ;;  %v1238_v51 = vmin.f32 %v342_v46, 16.0  ;;  %v290_v52 = vadd.f32 %v289_v50, %v104_v39  ;;  %v303_v54 = vpop.f32.mrf.mxu1  ;;  %v1091_v47 = vld [vmem:[#allocation4 + $0x54] sm:$0xf0] }
  0xb5   :  { %v1240_v53 = vadd.f32 %v329_v49, %v316_v48  ;;  %v344_v55 = vmul.f32 2.1237322e-06, %v1238_v51  ;;  %v355_v56 = vmul.f32 3.8918573e-05, %v1238_v51  ;;  %v1244_v57 = vadd.f32 %v303_v54, %v290_v52  ;;  %v1090_v54 = vld [vmem:[#allocation4 + $0x54] sm:$0xf] }
  0xb6   :  { %v961_v52 = vor.u32 %v1091_v47, %v960_v40  ;;  %v965_v63 = vor.u32 %v1090_v54, %v962_v60  ;;  %v1087_v60 = vld [vmem:[#allocation4 + $0x34] sm:$0xf0] }
  0xb7   :  { %v1247_v59 = vmul.f32 0.70710677, %v1240_v53  ;;  %v345_v61 = vadd.f32 0.00028619796, %v344_v55  ;;  %v356_v62 = vadd.f32 0.001143296, %v355_v56 }
  0xb8   :  { %v1252_v1 = vmul.f32 0.70710677, %v1244_v57  ;;  %710 = vmatpush.bf16.msrb.mxu0 %v961_v52  ;;  %738 = vmatpush.bf16.msrb.mxu2 %v965_v63 }
  0xb9   :  { %v382_v0 = vmul.f32 %v1247_v59, %v1247_v59  ;;  %v346_v4 = vmul.f32 %v345_v61, %v1238_v51  ;;  %v357_v5 = vmul.f32 %v356_v62, %v1238_v51 }
  0xba   :  { %v317_v6 = vpop.f32.mrf.mxu2  ;;  %v422_v12 = vmul.f32 %v1252_v1, %v1252_v1 }
  0xbb   :  { %v1256_v11 = vmin.f32 %v382_v0, 16.0  ;;  %v318_v13 = vadd.f32 %v317_v6, %v105_v44  ;;  %v347_v16 = vadd.f32 0.0036580483, %v346_v4  ;;  %v358_v17 = vadd.f32 0.014752088, %v357_v5  ;;  %v331_v23 = vpop.f32.mrf.mxu3 }
  0xbc   :  { %v1262_v22 = vmin.f32 %v422_v12, 16.0  ;;  %v1032_v0 = vld [vmem:[#allocation4 + $0xe0] sm:$0xf] }
  0xbd   :  { %v384_v20 = vmul.f32 2.1237322e-06, %v1256_v11  ;;  %v395_v21 = vmul.f32 3.8918573e-05, %v1256_v11  ;;  %v348_v24 = vmul.f32 %v347_v16, %v1238_v51  ;;  %v359_v25 = vmul.f32 %v358_v17, %v1238_v51  ;;  %v1108_v16 = vld [vmem:[#allocation4 + $0xe4] sm:$0xf] }
  0xbe   :  { %v1266_v26 = vadd.f32 %v331_v23, %v318_v13  ;;  %v424_v32 = vmul.f32 2.1237322e-06, %v1262_v22  ;;  %v435_v36 = vmul.f32 3.8918573e-05, %v1262_v22  ;;  %v1033_v9 = vor.u32 %v1109_v2, %v1032_v0  ;;  %v1034_v17 = vld [vmem:[#allocation4 + $0xe8] sm:$0xf0] }
  0xbf   :  { %v385_v30 = vadd.f32 0.00028619796, %v384_v20  ;;  %v396_v31 = vadd.f32 0.001143296, %v395_v21  ;;  %v349_v34 = vadd.f32 0.05243302, %v348_v24  ;;  %v1037_v28 = vor.u32 %v1108_v16, %v1034_v17 }
  0xc0   :  { %v360_v35 = vadd.f32 0.112945676, %v359_v25  ;;  %v425_v39 = vadd.f32 0.00028619796, %v424_v32  ;;  %v436_v44 = vadd.f32 0.001143296, %v435_v36  ;;  %723 = vmatpush.bf16.msrb.mxu1 %v1033_v9 }
  0xc1   :  { %v397_v38 = vmul.f32 %v396_v31, %v1256_v11  ;;  %v386_v42 = vmul.f32 %v385_v30, %v1256_v11  ;;  %v1274_v46 = vmul.f32 0.70710677, %v1266_v26  ;;  %v350_v48 = vmul.f32 %v349_v34, %v1238_v51  ;;  %v952_v23 = vld [vmem:[#allocation4 + $0x40] sm:$0xf]  ;;  %v1089_v24 = vld [vmem:[#allocation4 + $0x44] sm:$0xf0]  ;;  %751 = vmatpush.bf16.msrb.mxu3 %v1037_v28 }
  0xc2   :  { %v361_v41 = vmul.f32 %v360_v35, %v1238_v51  ;;  %v426_v50 = vmul.f32 %v425_v39, %v1262_v22  ;;  %v437_v56 = vmul.f32 %v436_v44, %v1262_v22  ;;  %v954_v32 = vld [vmem:[#allocation4 + $0x48] sm:$0xf0]  ;;  %v1024_v36 = vld [vmem:[#allocation4 + $0xd0] sm:$0xf] }
  0xc3   :  { %v398_v49 = vadd.f32 0.014752088, %v397_v38  ;;  %v462_v58 = vmul.f32 %v1274_v46, %v1274_v46  ;;  %v351_v6 = vadd.f32 0.18741608, %v350_v48  ;;  %v387_v7 = vadd.f32 0.0036580483, %v386_v42 }
  0xc4   :  { %v362_v55 = vadd.f32 0.4994258, %v361_v41  ;;  %v427_v62 = vadd.f32 0.0036580483, %v426_v50  ;;  %v438_v4 = vadd.f32 0.014752088, %v437_v56  ;;  %v957_v41 = vor.u32 %v1088_v29, %v954_v32 }
  0xc5   :  { %v399_v61 = vmul.f32 %v398_v49, %v1256_v11  ;;  %v1283_v5 = vmin.f32 %v462_v58, 16.0  ;;  %v352_v19 = vmul.f32 %v351_v6, %v1238_v51  ;;  %v388_v20 = vmul.f32 %v387_v7, %v1256_v11  ;;  %v1026_v56 = vld [vmem:[#allocation4 + $0xd8] sm:$0xf0]  ;;  %v944_v58 = vld [vmem:[#allocation4 + $0x30] sm:$0xf] }
  0xc6   :  { %v363_v3 = vmul.f32 %v362_v55, %v1238_v51  ;;  %v439_v12 = vmul.f32 %v438_v4, %v1262_v22  ;;  %v428_v15 = vmul.f32 %v427_v62, %v1262_v22  ;;  %v953_v51 = vor.u32 %v1089_v24, %v952_v23  ;;  %739 = vmatpush.bf16.msrb.mxu2 %v957_v41  ;;  %v1106_v55 = vld [vmem:[#allocation4 + $0xd4] sm:$0xf]  ;;  %v1016_v7 = vld [vmem:[#allocation4 + $0xc0] sm:$0xf]  ;;  %v1084_v29 = vld [vmem:[#allocation4 + $0x24] sm:$0xf] }
  0xc7   :  { %v400_v8 = vadd.f32 0.112945676, %v399_v61  ;;  %v464_v13 = vmul.f32 2.1237322e-06, %v1283_v5  ;;  %v475_v18 = vmul.f32 3.8918573e-05, %v1283_v5  ;;  %v1025_v49 = vor.u32 %v1107_v37, %v1024_v36 }
  0xc8   :  { %v1285_v10 = vadd.f32 1.0, %v363_v3  ;;  %v440_v25 = vadd.f32 0.112945676, %v439_v12  ;;  %v429_v31 = vadd.f32 0.05243302, %v428_v15  ;;  %711 = vmatpush.bf16.msrb.mxu0 %v953_v51  ;;  %v1029_v6 = vor.u32 %v1106_v55, %v1026_v56 }
  0xc9   :  { %v401_v14 = vmul.f32 %v400_v8, %v1256_v11  ;;  %v465_v27 = vadd.f32 0.00028619796, %v464_v13  ;;  %v476_v35 = vadd.f32 0.001143296, %v475_v18  ;;  %v1298_v38 = vadd.f32 1.1283791, %v352_v19  ;;  %724 = vmatpush.bf16.msrb.mxu1 %v1025_v49 }
  0xca   :  { %1116 = vrcp.f32 %v1285_v10  ;;  %v441_v33 = vmul.f32 %v440_v25, %v1262_v22  ;;  %v389_v39 = vadd.f32 0.05243302, %v388_v20  ;;  %v374_v44 = vand.u32 2147483647, %v1285_v10  ;;  %v1086_v61 = vld [vmem:[#allocation4 + $0x34] sm:$0xf]  ;;  %752 = vmatpush.bf16.msrb.mxu3 %v1029_v6 }
  0xcb   :  { %v402_v21 = vadd.f32 0.4994258, %v401_v14  ;;  %v466_v34 = vmul.f32 %v465_v27, %v1283_v5  ;;  %v477_v48 = vmul.f32 %v476_v35, %v1283_v5  ;;  %v430_v52 = vmul.f32 %v429_v31, %v1262_v22  ;;  %v946_v3 = vld [vmem:[#allocation4 + $0x38] sm:$0xf0]  ;;  %v1105_v8 = vld [vmem:[#allocation4 + $0xc4] sm:$0xf0] }
  0xcc   :  { %v442_v47 = vadd.f32 0.4994258, %v441_v33  ;;  %v390_v63 = vmul.f32 %v389_v39, %v1256_v11  ;;  %v376_v4 = vand.u32 2147483648, %v1285_v10  ;;  %v945_v16 = vor.u32 %v1087_v60, %v944_v58  ;;  %v1104_v19 = vld [vmem:[#allocation4 + $0xc4] sm:$0xf] }
  0xcd   :  { %v403_v30 = vmul.f32 %v402_v21, %v1256_v11  ;;  %v467_v54 = vadd.f32 0.0036580483, %v466_v34  ;;  %v478_v2 = vadd.f32 0.014752088, %v477_v48  ;;  %v431_v12 = vadd.f32 0.18741608, %v430_v52 }
  0xce   :  { %v443_v0 = vmul.f32 %v442_v47, %v1262_v22  ;;  %v949_v17 = vor.u32 %v1086_v61, %v946_v3  ;;  %v1017_v18 = vor.u32 %v1105_v8, %v1016_v7  ;;  %v1018_v20 = vld [vmem:[#allocation4 + $0xc8] sm:$0xf0]  ;;  %v391_v24 = vadd.f32 0.18741608, %v390_v63  ;;  %v936_v25 = vld [vmem:[#allocation4 + $0x20] sm:$0xf]  ;;  %712 = vmatpush.bf16.msrb.mxu0 %v945_v16 }
  0xcf   :  { %v1300_v40 = vadd.f32 1.0, %v403_v30  ;;  %v479_v14 = vmul.f32 %v478_v2, %v1283_v5  ;;  %v468_v15 = vmul.f32 %v467_v54, %v1283_v5  ;;  %v1085_v27 = vld [vmem:[#allocation4 + $0x24] sm:$0xf0]  ;;  %v938_v30 = vld [vmem:[#allocation4 + $0x28] sm:$0xf0]  ;;  %vm370_vm1 = vweird.f32 %v1285_v10 }
  0xd0   :  { %v1302_v42 = vpop.eup %1116  ;;  %v1314_v13 = vadd.f32 1.0, %v443_v0  ;;  %740 = vmatpush.bf16.msrb.mxu2 %v949_v17  ;;  %v1008_v31 = vld [vmem:[#allocation4 + $0xb0] sm:$0xf]  ;;  %725 = vmatpush.bf16.msrb.mxu1 %v1017_v18  ;;  %v1021_v33 = vor.u32 %v1104_v19, %v1018_v20  ;;  %v1103_v34 = vld [vmem:[#allocation4 + $0xb4] sm:$0xf0]  ;;  %v377_v36 = vor.u32 1.1754944e-38, %v376_v4  ;;  %v432_v39 = vmul.f32 %v431_v12, %v1262_v22 }
  0xd1   :  { %v366_v50 = vmul.f32 %v1302_v42, %v1285_v10  ;;  %1118 = vrcp.f32 %v1300_v40  ;;  %vm371_vm0 = vweird.f32 %v1302_v42  ;;  %v480_v32 = vadd.f32 0.112945676, %v479_v14  ;;  %v1102_v35 = vld [vmem:[#allocation4 + $0xb4] sm:$0xf]  ;;  %v1010_v47 = vld [vmem:[#allocation4 + $0xb8] sm:$0xf0] }
  0xd2   :  { %1120 = vrcp.f32 %v1314_v13  ;;  %vm1328_vm2 = vmor %vm370_vm1, %vm371_vm0  ;;  %v469_v41 = vadd.f32 0.05243302, %v468_v15  ;;  %753 = vmatpush.bf16.msrb.mxu3 %v1021_v33  ;;  %v941_v52 = vor.u32 %v1084_v29, %v938_v30  ;;  %v928_v54 = vld [vmem:[#allocation4 + $0x10] sm:$0xf]  ;;  %v1083_v55 = vld [vmem:[#allocation4 + $0x14] sm:$0xf0]  ;;  %v1009_v58 = vor.u32 %v1103_v34, %v1008_v31 }
  0xd3   :  { %v367_v62 = vsub.f32 1.0, %v366_v50  ;;  %v481_v49 = vmul.f32 %v480_v32, %v1283_v5  ;;  %v937_v50 = vor.u32 %v1085_v27, %v936_v25  ;;  %v1082_v56 = vld [vmem:[#allocation4 + $0x14] sm:$0xf]  ;;  %v1013_v60 = vor.u32 %v1102_v35, %v1010_v47  ;;  %v930_v61 = vld [vmem:[#allocation4 + $0x18] sm:$0xf0] }
  0xd4   :  { %v1101_v63 = vld [vmem:[#allocation4 + $0xa4] sm:$0xf0]  ;;  %vm375_vm3 = vcmp.eq.f32.partialorder %v374_v44, 8.507059e+37  ;;  %741 = vmatpush.bf16.msrb.mxu2 %v941_v52  ;;  %v933_v2 = vor.u32 %v1082_v56, %v930_v61  ;;  %v1100_v3 = vld [vmem:[#allocation4 + $0xa4] sm:$0xf]  ;;  %v354_v4 = vmul.f32 %v1298_v38, %v1234_v45  ;;  %726 = vmatpush.bf16.msrb.mxu1 %v1009_v58  ;;  %v392_v18 = vmul.f32 %v391_v24, %v1256_v11 }
  0xd5   :  { %v368_v9 = vmul.f32 %v1302_v42, %v367_v62  ;;  %v1000_v62 = vld [vmem:[#allocation4 + $0xa0] sm:$0xf]  ;;  %v482_v0 = vadd.f32 0.4994258, %v481_v49  ;;  %713 = vmatpush.bf16.msrb.mxu0 %v937_v50  ;;  %v433_v7 = vadd.f32 1.1283791, %v432_v39  ;;  %v470_v19 = vmul.f32 %v469_v41, %v1283_v5 }
  0xd6   :  { %v920_v12 = vld [vmem:[#allocation4] sm:$0xf]  ;;  %754 = vmatpush.bf16.msrb.mxu3 %v1013_v60  ;;  %v1001_v14 = vor.u32 %v1101_v63, %v1000_v62  ;;  %v1081_v16 = vld [vmem:[#allocation4 + $0x4] sm:$0xf0]  ;;  %v1080_v17 = vld [vmem:[#allocation4 + $0x4] sm:$0xf]  ;;  %vm410_vm5 = vweird.f32 %v1300_v40  ;;  %vm450_vm7 = vweird.f32 %v1314_v13 }
  0xd7   :  { %v1318_v21 = vpop.eup %1118  ;;  %v369_v23 = vadd.f32 %v1302_v42, %v368_v9  ;;  %v1002_v9 = vld [vmem:[#allocation4 + $0xa8] sm:$0xf0]  ;;  %v483_v44 = vmul.f32 %v482_v0, %v1283_v5  ;;  %v456_v38 = vand.u32 2147483648, %v1314_v13  ;;  %v1099_v30 = vld [vmem:[#allocation4 + $0x94] sm:$0xf0] }
  0xd8   :  { %v406_v28 = vmul.f32 %v1318_v21, %v1300_v40  ;;  %v1337_v22 = vpop.eup %1120  ;;  %v1005_v15 = vor.u32 %v1100_v3, %v1002_v9  ;;  %v922_v20 = vld [vmem:[#allocation4 + $0x8] sm:$0xf0]  ;;  %742 = vmatpush.bf16.msrb.mxu2 %v933_v2  ;;  %v1098_v31 = vld [vmem:[#allocation4 + $0x94] sm:$0xf]  ;;  %v454_v11 = vand.u32 2147483647, %v1314_v13  ;;  %727 = vmatpush.bf16.msrb.mxu1 %v1001_v14  ;;  %vm411_vm6 = vweird.f32 %v1318_v21 }
  0xd9   :  { %v373_v48 = vsel %vm1328_vm2, %v1302_v42, %v369_v23  ;;  %v929_v42 = vor.u32 %v1083_v55, %v928_v54  ;;  %v446_v8 = vmul.f32 %v1337_v22, %v1314_v13  ;;  %v992_v23 = vld [vmem:[#allocation4 + $0x90] sm:$0xf]  ;;  %v1350_v27 = vadd.f32 1.0, %v483_v44  ;;  %v994_v33 = vld [vmem:[#allocation4 + $0x98] sm:$0xf0]  ;;  %vm1369_vm9 = vmor %vm410_vm5, %vm411_vm6 }
  0xda   :  { %v407_v37 = vsub.f32 1.0, %v406_v28  ;;  %v378_v6 = vsel %vm375_vm3, %v377_v36, %v373_v48  ;;  %v921_v28 = vor.u32 %v1081_v16, %v920_v12  ;;  %v925_v29 = vor.u32 %v1080_v17, %v922_v20  ;;  %755 = vmatpush.bf16.msrb.mxu3 %v1005_v15  ;;  %v984_v35 = vld [vmem:[#allocation4 + $0x80] sm:$0xf]  ;;  %v1097_v51 = vld [vmem:[#allocation4 + $0x84] sm:$0xf0] }
  0xdb   :  { %v447_v45 = vsub.f32 1.0, %v446_v8  ;;  %v379_v25 = vmul.f32 %v378_v6, %v354_v4  ;;  %714 = vmatpush.bf16.msrb.mxu0 %v929_v42  ;;  %vm451_vm4 = vweird.f32 %v1337_v22  ;;  %v993_v24 = vor.u32 %v1099_v30, %v992_v23  ;;  %v1096_v41 = vld [vmem:[#allocation4 + $0x84] sm:$0xf]  ;;  %v986_v47 = vld [vmem:[#allocation4 + $0x88] sm:$0xf0] }
  0xdc   :  { %v408_v10 = vmul.f32 %v1318_v21, %v407_v37  ;;  %1122 = vrcp.f32 %v1350_v27  ;;  %v416_v36 = vand.u32 2147483648, %v1300_v40  ;;  %v997_v39 = vor.u32 %v1098_v31, %v994_v33  ;;  %vm452_vm8 = vmor %vm450_vm7, %vm451_vm4  ;;  %743 = vmatpush.bf16.msrb.mxu2 %v925_v29 }
  0xdd   :  { %v448_v32 = vmul.f32 %v1337_v22, %v447_v45  ;;  %v914_v48 = vclamps-f32 %v379_v25, 1.0  ;;  %v414_v49 = vand.u32 2147483647, %v1300_v40  ;;  %v457_v50 = vor.u32 1.1754944e-38, %v456_v38  ;;  %728 = vmatpush.bf16.msrb.mxu1 %v993_v24 }
  0xde   :  { %v409_v34 = vadd.f32 %v1318_v21, %v408_v10  ;;  %v471_v52 = vadd.f32 0.18741608, %v470_v19  ;;  %v434_v13 = vmul.f32 %v433_v7, %v1252_v1  ;;  %vm455_vm10 = vcmp.eq.f32.partialorder %v454_v11, 8.507059e+37  ;;  %756 = vmatpush.bf16.msrb.mxu3 %v997_v39 }
  0xdf   :  { %v449_v37 = vadd.f32 %v1337_v22, %v448_v32  ;;  %715 = vmatpush.bf16.msrb.mxu0 %v921_v28  ;;  %v985_v56 = vor.u32 %v1097_v51, %v984_v35  ;;  %v393_v58 = vadd.f32 1.1283791, %v392_v18  ;;  %v989_v62 = vor.u32 %v1096_v41, %v986_v47 }
  0xe0   :  { %v413_v60 = vsel %vm1369_vm9, %v1318_v21, %v409_v34  ;;  %v417_v40 = vor.u32 1.1754944e-38, %v416_v36  ;;  %v502_v42 = vadd.f32 1.0, %v914_v48  ;;  %vm415_vm11 = vcmp.eq.f32.partialorder %v414_v49, 8.507059e+37 }
  0xe1   :  { %v453_v55 = vsel %vm452_vm8, %v1337_v22, %v449_v37  ;;  %v472_v1 = vmul.f32 %v471_v52, %v1283_v5  ;;  %729 = vmatpush.bf16.msrb.mxu1 %v985_v56  ;;  %v334_v4 = vmul.f32 0.5, %v1231_v43  ;;  %v394_v6 = vmul.f32 %v393_v58, %v1247_v59 }
  0xe2   :  { %v458_v61 = vsel %vm455_vm10, %v457_v50, %v453_v55  ;;  %v1123_v0 = vpop.eup %1122  ;;  %v418_v2 = vsel %vm415_vm11, %v417_v40, %v413_v60  ;;  %757 = vmatpush.bf16.msrb.mxu3 %v989_v62  ;;  %v336_v21 = vmul.f32 0.5, %v1244_v57  ;;  %v496_v44 = vand.u32 2147483648, %v1350_v27 }
  0xe3   :  { %v459_v63 = vmul.f32 %v458_v61, %v434_v13  ;;  %v486_v3 = vmul.f32 %v1123_v0, %v1350_v27  ;;  %v506_v9 = vmul.f32 %v502_v42, %v334_v4  ;;  %v419_v12 = vmul.f32 %v418_v2, %v394_v6 }
  0xe4   :  { %v473_v10 = vadd.f32 1.1283791, %v472_v1  ;;  %vm491_vm12 = vweird.f32 %v1123_v0  ;;  %v494_v15 = vand.u32 2147483647, %v1350_v27  ;;  %vm490_vm13 = vweird.f32 %v1350_v27 }
  0xe5   :  { %v916_v22 = vclamps-f32 %v459_v63, 1.0  ;;  %v487_v8 = vsub.f32 1.0, %v486_v3  ;;  %vm492_vm14 = vmor %vm490_vm13, %vm491_vm12  ;;  %v497_v59 = vor.u32 1.1754944e-38, %v496_v44  ;;  %v915_v17 = vclamps-f32 %v419_v12, 1.0 }
  0xe6   :  { %v474_v57 = vmul.f32 %v473_v10, %v1274_v46  ;;  %vm495_vm15 = vcmp.eq.f32.partialorder %v494_v15, 8.507059e+37  ;;  %v335_v23 = vmul.f32 0.5, %v1240_v53  ;;  %v337_v25 = vmul.f32 0.5, %v1266_v26  ;;  %v56_v46 = vld [vmem:[%s1408_s4] sm:$0x3] }
  0xe7   :  { %v504_v7 = vadd.f32 1.0, %v916_v22  ;;  %v488_v14 = vmul.f32 %v1123_v0, %v487_v8  ;;  %v503_v19 = vadd.f32 1.0, %v915_v17  ;;  %v58_v32 = vperm.slane %v56_v46, 0 }
  0xe8   :  { %v59_v53 = vperm.slane %v56_v46, 1 }
  0xe9   :  { %v508_v5 = vmul.f32 %v504_v7, %v336_v21  ;;  %v489_v16 = vadd.f32 %v1123_v0, %v488_v14  ;;  %v507_v27 = vmul.f32 %v503_v19, %v335_v23 }
  0xeb   :  { %v514_v43 = vpack.c.bf16 %v508_v5, %v506_v9  ;;  %v493_v18 = vsel %vm492_vm14, %v1123_v0, %v489_v16 }
  0xec   :  { %v498_v45 = vsel %vm495_vm15, %v497_v59, %v493_v18 }
  0xed   :  { %716 = vmatmul.bf16.vlgmr.msrb.gmra.mxu0 %v514_v43  ;;  %744 = vmatmul.bf16.vlgmr.msrb.gmra.mxu2 %v514_v43  ;;  %v499_v38 = vmul.f32 %v498_v45, %v474_v57 }
  0xef   :  { %v917_v20 = vclamps-f32 %v499_v38, 1.0 }
  0xf1   :  { %v505_v28 = vadd.f32 1.0, %v917_v20 }
  0xf3   :  { %v509_v29 = vmul.f32 %v505_v28, %v337_v25 }
  0xf5   :  { %v515_v30 = vpack.c.bf16 %v509_v29, %v507_v27 }
  0xf7   :  { %730 = vmatmul.bf16.vlgmr.msrb.gmra.mxu1 %v515_v30  ;;  %758 = vmatmul.bf16.vlgmr.msrb.gmra.mxu3 %v515_v30 }
 0x16a   :  { %v717_v31 = vpop.f32.mrf.mxu0 }
 0x170   :  { %v745_v34 = vpop.f32.mrf.mxu2 }
 0x172   :  { %v719_v51 = vpop.f32.mrf.mxu0 }
 0x174   :  { %v731_v11 = vpop.f32.mrf.mxu1 }
 0x175   :  { %v732_v24 = vadd.f32 %v731_v11, %v717_v31 }
 0x177   :  { %v764_v33 = vadd.f32 %v732_v24, %v58_v32 }
 0x178   :  { %v747_v47 = vpop.f32.mrf.mxu2 }
 0x179   :  { %768 = vst [vmem:[%s1409_s5] sm:$0xff] %v764_v33 }
 0x17a   :  { %v759_v26 = vpop.f32.mrf.mxu3 }
 0x17b   :  { %v760_v35 = vadd.f32 %v759_v26, %v745_v34 }
 0x17c   :  { %v733_v36 = vpop.f32.mrf.mxu1 }
 0x17d   :  { %v765_v37 = vadd.f32 %v760_v35, %v59_v53  ;;  %v734_v39 = vadd.f32 %v733_v36, %v719_v51 }
 0x17f   :  { %769 = vst [vmem:[%s1409_s5 + $0x8] sm:$0xff] %v765_v37  ;;  %v766_v41 = vadd.f32 %v734_v39, %v58_v32 }
 0x181   :  { %770 = vst [vmem:[%s1409_s5 + $0x10] sm:$0xff] %v766_v41 }
 0x182   :  { %v761_v48 = vpop.f32.mrf.mxu3 }
 0x183   :  { %v762_v49 = vadd.f32 %v761_v48, %v747_v47 }
 0x185   :  { %v767_v50 = vadd.f32 %v762_v49, %v59_v53 }
 0x187   :  { %771 = vst [vmem:[%s1409_s5 + $0x18] sm:$0xff] %v767_v50 }
 0x188   :  { %776 = vsyncpa [#allocation3], 1 }
 0x189   :  { %777 = vsyncpa [#allocation5], 1 }

</bundles_post_ra>
